<compile_context>
chip_gen: v7x
topology: tpu7x:2x2x1
jax: 0.10.0
libtpu: 0.0.40
codegen_flags: <defaults>
</compile_context>

<pallas_src>
import jax
import jax.numpy as jnp
from jax.experimental import pallas as pl
from jax.experimental.pallas import tpu as pltpu

INPUT_SIZE = 2
HIDDEN_SIZE = 3
OUTPUT_SIZE = 1

SUB = 8              # sublane quantum
LANE = 128           # lane quantum
MAX_TILE_ROWS = 512  # 512 rows * 128 lanes = 64K batch elements per grid step


def mlp_kernel(params_ref, x0_ref, x1_ref, o_ref):
    # params_ref : SMEM (13,) f32 packed as
    #   [0:3] w1[0,:]  [3:6] w1[1,:]  [6:9] b1  [9:12] w2[:,0]  [12] b2
    # x0_ref, x1_ref : VMEM (TILE_R, LANE) f32 -- batch folded onto (sublane, lane)
    # o_ref          : VMEM (TILE_R, LANE) f32
    x0 = x0_ref[...]
    x1 = x1_ref[...]

    # Hidden layer + output contraction, fully unrolled on the VPU (no MXU).
    y = None
    for j in range(HIDDEN_SIZE):
        w0j = params_ref[j]
        w1j = params_ref[HIDDEN_SIZE + j]
        b1j = params_ref[2 * HIDDEN_SIZE + j]
        w2j = params_ref[3 * HIDDEN_SIZE + j]
        h = jnp.maximum(w0j * x0 + w1j * x1 + b1j, 0.0)   # relu
        term = w2j * h
        y = term if y is None else y + term
    y = y + params_ref[4 * HIDDEN_SIZE]                    # + b2

    # Exact sigmoid: exp goes to the EUP; divide is negligible (mem-bound kernel).
    o_ref[...] = 1.0 / (1.0 + jnp.exp(-y))


def _tiling(batch):
    """Static (Python-int) tiling decisions for a given batch size."""
    rows = -(-batch // LANE)                    # ceil(B / 128) rows of 128 lanes
    rows = max(-(-rows // SUB) * SUB, SUB)      # round rows up to a sublane multiple
    if rows >= 2 * SUB:
        # >= 2 parallel grid steps (v7x has 2 TensorCores), capped at 64K elems/step.
        tile_rows = min(MAX_TILE_ROWS, -(-((rows + 1) // 2) // SUB) * SUB)
    else:
        tile_rows = rows                        # tiny batch: single 8-row tile
    n_tiles = -(-rows // tile_rows)
    rows = n_tiles * tile_rows
    return rows, tile_rows, n_tiles


@jax.jit
def simple_nn_forward(x, w1, b1, w2, b2):
    """Forward pass.

    x : (B, INPUT_SIZE) f32  (PyTorch (N, features) layout)
    w1: (INPUT_SIZE, HIDDEN_SIZE)   (pre-transposed vs torch's (out, in))
    b1: (HIDDEN_SIZE,)
    w2: (HIDDEN_SIZE, OUTPUT_SIZE)
    b2: (OUTPUT_SIZE,)
    returns (B, OUTPUT_SIZE) f32
    """
    B = x.shape[0]
    rows, tile_rows, n_tiles = _tiling(B)
    b_pad = rows * LANE
    pad = b_pad - B

    # Feature-major (8,128)-dense slabs; slice+pad+reshape fuses inside this jit
    # (no zero-buffer + dynamic-update-slice, no full transpose pass).
    x_f = x.astype(jnp.float32)
    x0 = jnp.pad(x_f[:, 0], (0, pad)).reshape(rows, LANE)
    x1 = jnp.pad(x_f[:, 1], (0, pad)).reshape(rows, LANE)

    # All 13 weight/bias scalars packed into one SMEM array (one tiny transfer).
    params = jnp.concatenate(
        [w1.reshape(-1), b1.reshape(-1), w2.reshape(-1), b2.reshape(-1)]
    ).astype(jnp.float32)

    out_slab = pl.pallas_call(
        mlp_kernel,
        out_shape=jax.ShapeDtypeStruct((rows, LANE), jnp.float32),
        grid_spec=pltpu.PrefetchScalarGridSpec(
            num_scalar_prefetch=0,
            grid=(n_tiles,),
            in_specs=[
                # Packed weights/biases in SMEM (not part of the VMEM pipeline).
                pl.BlockSpec(memory_space=pltpu.MemorySpace.SMEM),
                # (8,128)-dense batch slabs, one per input feature.
                pl.BlockSpec((tile_rows, LANE), lambda i: (i, 0)),
                pl.BlockSpec((tile_rows, LANE), lambda i: (i, 0)),
            ],
            out_specs=pl.BlockSpec((tile_rows, LANE), lambda i: (i, 0)),
        ),
        compiler_params=pltpu.CompilerParams(
            dimension_semantics=("parallel",)),
    )(params, x0, x1)

    # Drop padding; pure reshape+slice (no transpose) since OUTPUT_SIZE == 1.
    return out_slab.reshape(b_pad)[:B].reshape(B, OUTPUT_SIZE)


def init_params(key):
    # Deterministic init mimicking nn.Linear's U(-1/sqrt(fan_in), 1/sqrt(fan_in)).
    k1, k2, k3, k4 = jax.random.split(key, 4)
    lim1 = 1.0 / jnp.sqrt(INPUT_SIZE)
    lim2 = 1.0 / jnp.sqrt(HIDDEN_SIZE)
    w1 = jax.random.uniform(k1, (INPUT_SIZE, HIDDEN_SIZE), jnp.float32, -lim1, lim1)
    b1 = jax.random.uniform(k2, (HIDDEN_SIZE,), jnp.float32, -lim1, lim1)
    w2 = jax.random.uniform(k3, (HIDDEN_SIZE, OUTPUT_SIZE), jnp.float32, -lim2, lim2)
    b2 = jax.random.uniform(k4, (OUTPUT_SIZE,), jnp.float32, -lim2, lim2)
    return w1, b1, w2, b2


def reference(x, w1, b1, w2, b2):
    # Pure-JAX reference of the same math (matches the PyTorch module).
    return jax.nn.sigmoid(jnp.maximum(x @ w1 + b1, 0.0) @ w2 + b2)


if __name__ == "__main__":
    key = jax.random.PRNGKey(0)
    w1, b1, w2, b2 = init_params(key)

    # Canonical XOR batch (B=4).
    x_xor = jnp.array([[0.0, 0.0],
                       [0.0, 1.0],
                       [1.0, 0.0],
                       [1.0, 1.0]], dtype=jnp.float32)
    out_xor = jax.block_until_ready(simple_nn_forward(x_xor, w1, b1, w2, b2))
    ref_xor = reference(x_xor, w1, b1, w2, b2)
    assert out_xor.shape == (4, OUTPUT_SIZE)
    assert jnp.allclose(out_xor, ref_xor, atol=1e-5, rtol=1e-5)

    # Non-multiple-of-128 batch: exercises lane/sublane padding (single tile).
    xb = jax.random.normal(jax.random.PRNGKey(1), (300, INPUT_SIZE), jnp.float32)
    out_b = jax.block_until_ready(simple_nn_forward(xb, w1, b1, w2, b2))
    assert out_b.shape == (300, OUTPUT_SIZE)
    assert jnp.allclose(out_b, reference(xb, w1, b1, w2, b2), atol=1e-5, rtol=1e-5)

    # Batch that splits into 2 parallel grid steps (two 8x128-row tiles).
    xc = jax.random.normal(jax.random.PRNGKey(2), (2048, INPUT_SIZE), jnp.float32)
    out_c = jax.block_until_ready(simple_nn_forward(xc, w1, b1, w2, b2))
    assert out_c.shape == (2048, OUTPUT_SIZE)
    assert jnp.allclose(out_c, reference(xc, w1, b1, w2, b2), atol=1e-5, rtol=1e-5)

    print("KERNEL_OK")
</pallas_src>

<mosaic_0001>
module attributes {stable_mosaic.version = 11 : i64} {
  func.func @mlp_kernel(%arg0: i32, %arg1: memref<13xf32, #tpu.memory_space<smem>>, %arg2: memref<8x128xf32, #tpu.memory_space<vmem>>, %arg3: memref<8x128xf32, #tpu.memory_space<vmem>>, %arg4: memref<8x128xf32, #tpu.memory_space<vmem>>) attributes {dimension_semantics = [#tpu.dimension_semantics<parallel>], iteration_bounds = array<i64: 1>, scalar_prefetch = 0 : i64, scratch_operands = 0 : i64, tpu.core_type = #tpu.core_type<tc>, window_params = [{transform_indices = @transform_0, window_bounds = array<i64: 13>}, {transform_indices = @transform_1, window_bounds = array<i64: 8, 128>}, {transform_indices = @transform_2, window_bounds = array<i64: 8, 128>}, {transform_indices = @transform_3, window_bounds = array<i64: 8, 128>}]} {
    %c0 = arith.constant 0 : index
    %c0_0 = arith.constant 0 : index
    %0 = vector.load %arg2[%c0, %c0_0] : memref<8x128xf32, #tpu.memory_space<vmem>>, vector<8x128xf32>
    %c0_1 = arith.constant 0 : index
    %c0_2 = arith.constant 0 : index
    %1 = vector.load %arg3[%c0_1, %c0_2] : memref<8x128xf32, #tpu.memory_space<vmem>>, vector<8x128xf32>
    %c0_3 = arith.constant 0 : index
    %2 = memref.load %arg1[%c0_3] : memref<13xf32, #tpu.memory_space<smem>>
    %c3 = arith.constant 3 : index
    %3 = memref.load %arg1[%c3] : memref<13xf32, #tpu.memory_space<smem>>
    %c6 = arith.constant 6 : index
    %4 = memref.load %arg1[%c6] : memref<13xf32, #tpu.memory_space<smem>>
    %c9 = arith.constant 9 : index
    %5 = memref.load %arg1[%c9] : memref<13xf32, #tpu.memory_space<smem>>
    %6 = vector.broadcast %2 : f32 to vector<8x128xf32>
    %7 = arith.mulf %6, %0 : vector<8x128xf32>
    %8 = vector.broadcast %3 : f32 to vector<8x128xf32>
    %9 = arith.mulf %8, %1 : vector<8x128xf32>
    %10 = arith.addf %7, %9 : vector<8x128xf32>
    %11 = vector.broadcast %4 : f32 to vector<8x128xf32>
    %12 = arith.addf %10, %11 : vector<8x128xf32>
    %cst = arith.constant 0.000000e+00 : f32
    %13 = vector.broadcast %cst : f32 to vector<8x128xf32>
    %14 = arith.maximumf %12, %13 : vector<8x128xf32>
    %15 = vector.broadcast %5 : f32 to vector<8x128xf32>
    %16 = arith.mulf %15, %14 : vector<8x128xf32>
    %c1 = arith.constant 1 : index
    %17 = memref.load %arg1[%c1] : memref<13xf32, #tpu.memory_space<smem>>
    %c4 = arith.constant 4 : index
    %18 = memref.load %arg1[%c4] : memref<13xf32, #tpu.memory_space<smem>>
    %c7 = arith.constant 7 : index
    %19 = memref.load %arg1[%c7] : memref<13xf32, #tpu.memory_space<smem>>
    %c10 = arith.constant 10 : index
    %20 = memref.load %arg1[%c10] : memref<13xf32, #tpu.memory_space<smem>>
    %21 = vector.broadcast %17 : f32 to vector<8x128xf32>
    %22 = arith.mulf %21, %0 : vector<8x128xf32>
    %23 = vector.broadcast %18 : f32 to vector<8x128xf32>
    %24 = arith.mulf %23, %1 : vector<8x128xf32>
    %25 = arith.addf %22, %24 : vector<8x128xf32>
    %26 = vector.broadcast %19 : f32 to vector<8x128xf32>
    %27 = arith.addf %25, %26 : vector<8x128xf32>
    %cst_4 = arith.constant 0.000000e+00 : f32
    %28 = vector.broadcast %cst_4 : f32 to vector<8x128xf32>
    %29 = arith.maximumf %27, %28 : vector<8x128xf32>
    %30 = vector.broadcast %20 : f32 to vector<8x128xf32>
    %31 = arith.mulf %30, %29 : vector<8x128xf32>
    %32 = arith.addf %16, %31 : vector<8x128xf32>
    %c2 = arith.constant 2 : index
    %33 = memref.load %arg1[%c2] : memref<13xf32, #tpu.memory_space<smem>>
    %c5 = arith.constant 5 : index
    %34 = memref.load %arg1[%c5] : memref<13xf32, #tpu.memory_space<smem>>
    %c8 = arith.constant 8 : index
    %35 = memref.load %arg1[%c8] : memref<13xf32, #tpu.memory_space<smem>>
    %c11 = arith.constant 11 : index
    %36 = memref.load %arg1[%c11] : memref<13xf32, #tpu.memory_space<smem>>
    %37 = vector.broadcast %33 : f32 to vector<8x128xf32>
    %38 = arith.mulf %37, %0 : vector<8x128xf32>
    %39 = vector.broadcast %34 : f32 to vector<8x128xf32>
    %40 = arith.mulf %39, %1 : vector<8x128xf32>
    %41 = arith.addf %38, %40 : vector<8x128xf32>
    %42 = vector.broadcast %35 : f32 to vector<8x128xf32>
    %43 = arith.addf %41, %42 : vector<8x128xf32>
    %cst_5 = arith.constant 0.000000e+00 : f32
    %44 = vector.broadcast %cst_5 : f32 to vector<8x128xf32>
    %45 = arith.maximumf %43, %44 : vector<8x128xf32>
    %46 = vector.broadcast %36 : f32 to vector<8x128xf32>
    %47 = arith.mulf %46, %45 : vector<8x128xf32>
    %48 = arith.addf %32, %47 : vector<8x128xf32>
    %c12 = arith.constant 12 : index
    %49 = memref.load %arg1[%c12] : memref<13xf32, #tpu.memory_space<smem>>
    %50 = vector.broadcast %49 : f32 to vector<8x128xf32>
    %51 = arith.addf %48, %50 : vector<8x128xf32>
    %cst_6 = arith.constant 0.000000e+00 : f32
    %52 = vector.broadcast %cst_6 : f32 to vector<8x128xf32>
    %53 = arith.subf %52, %51 : vector<8x128xf32>
    %54 = math.exp %53 : vector<8x128xf32>
    %cst_7 = arith.constant 1.000000e+00 : f32
    %55 = vector.broadcast %cst_7 : f32 to vector<8x128xf32>
    %56 = arith.addf %55, %54 : vector<8x128xf32>
    %cst_8 = arith.constant 1.000000e+00 : f32
    %57 = vector.broadcast %cst_8 : f32 to vector<8x128xf32>
    %58 = arith.divf %57, %56 : vector<8x128xf32>
    %c0_9 = arith.constant 0 : index
    %c0_10 = arith.constant 0 : index
    %59 = vector.load %arg4[%c0_9, %c0_10] : memref<8x128xf32, #tpu.memory_space<vmem>>, vector<8x128xf32>
    tpu.vector_store %arg4[%c0_9, %c0_10], %58 {strides = array<i32>} : memref<8x128xf32, #tpu.memory_space<vmem>>, vector<8x128xf32>,
    return
  }
  func.func @transform_0(%arg0: i32) -> i32 {
    %c0_i32 = arith.constant 0 : i32
    %c0_i32_0 = arith.constant 0 : i32
    return %c0_i32 : i32
  }
  func.func @transform_1(%arg0: i32) -> (i32, i32) {
    %c0_i32 = arith.constant 0 : i32
    %c0_i32_0 = arith.constant 0 : i32
    return %arg0, %c0_i32 : i32, i32
  }
  func.func @transform_2(%arg0: i32) -> (i32, i32) {
    %c0_i32 = arith.constant 0 : i32
    %c0_i32_0 = arith.constant 0 : i32
    return %arg0, %c0_i32 : i32, i32
  }
  func.func @transform_3(%arg0: i32) -> (i32, i32) {
    %c0_i32 = arith.constant 0 : i32
    %c0_i32_0 = arith.constant 0 : i32
    return %arg0, %c0_i32 : i32, i32
  }
}

</mosaic_0001>

<bundles_post_ra>
// kernel: simple_nn_forward.1
= control target key start
LH: loop header
LB: loop body
LE: loop exit
PB: predicated region body
PF: predicated region fallthrough
CT: control target
= control target key end

     0   :  { %8 = vsyncpa [#allocation3], 0  ;;  %s155_s0 = inlined_call_operand.vmem [shape: f32[13], index: 0, kind: input, shape index: {}]   ;;  %s156_s1 = inlined_call_operand.vmem [shape: f32[8,128], index: 1, kind: input, shape index: {}]   ;;  %s157_s2 = inlined_call_operand.vmem [shape: f32[8,128], index: 2, kind: input, shape index: {}]   ;;  %s158_s3 = inlined_call_operand.vmem [shape: f32[8,128], index: 3, kind: output, shape index: {}]  }
   0x1   :  { %s15_s14 = sshll.u32 %s155_s0, 4  ;;  %s16_s14 = int_to_ptr.vmem [resolvable:$true] %s15_s14 }
   0x2   :  { %s105_s15 = scalar_lea.vmem %s16_s14, 16  ;;  %p110_p1 = scmp.lt.s32.totalorder %s16_s14, %s16_s14 }
   0x3   :  { %p106_p0 = scmp.ne.s32.totalorder %s16_s14, %s105_s15  ;;  %p111_p2 = scmp.lt.s32.totalorder %s105_s15, %s105_s15 }
   0x5   :  { %p112_p3 = por %p111_p2, %p110_p1 }
   0x7   :  { %p113_p4 = pnand %p112_p3, %p106_p0 }
   0x9   :  { %116 = shalt.err (!%p113_p4)
}
   0xa   :  { %s119_s16 = smov [#allocation2]  }
   0xb   :  { %18 = dma.vmem_to_smem %s16_s14, 16, %s119_s16, [#allocation3]  }
   0xc   :  { %117 = dma.done.wait [#allocation3], 16  }
   0xd   :  { %118 = vsyncadd [#allocation3], 4294967280 }
   0xe   :  { %26 = sfence }
   0xf   :  { %s29_s17 = sld [smem:[#allocation2]]  ;;  %s88_s18 = sld [smem:[#allocation2 + $0x3]]  ;;  %v27_v0 = vld [vmem:[%s156_s1] sm:$0xff] }
  0x10   :  { %s89_s19 = sld [smem:[#allocation2 + $0x6]]  ;;  %s91_s20 = sld [smem:[#allocation2 + $0x1]]  ;;  %v28_v1 = vld [vmem:[%s157_s2] sm:$0xff] }
  0x11   :  { %s92_s21 = sld [smem:[#allocation2 + $0x4]]  ;;  %s143_s22 = sld [smem:[#allocation2 + $0x9]] }
  0x12   :  { %s93_s0 = sld [smem:[#allocation2 + $0x7]]  ;;  %s95_s27 = sld [smem:[#allocation2 + $0x2]] }
  0x13   :  { %s96_s28 = sld [smem:[#allocation2 + $0x5]]  ;;  %s97_s29 = sld [smem:[#allocation2 + $0x8]] }
  0x14   :  { %s94_s30 = sld [smem:[#allocation2 + $0xa]]  ;;  %s98_s4 = sld [smem:[#allocation2 + $0xb]] }
  0x15   :  { %v33_v2 = vstv %s29_s17  ;;  %v35_v3 = vstv %s88_s18  ;;  %s99_s1 = sld [smem:[#allocation2 + $0xc]] }
  0x16   :  { %v34_v4 = vmul.f32 %v33_v2, %v27_v0  ;;  %v36_v5 = vmul.f32 %v35_v3, %v28_v1  ;;  %v38_v6 = vstv %s89_s19  ;;  %v47_v7 = vstv %s91_s20 }
  0x17   :  { %v49_v8 = vstv %s92_s21  ;;  %v48_v10 = vmul.f32 %v47_v7, %v27_v0  ;;  %v41_v19 = vstv %s143_s22 }
  0x18   :  { %v37_v9 = vadd.f32 %v36_v5, %v34_v4  ;;  %v50_v11 = vmul.f32 %v49_v8, %v28_v1  ;;  %v52_v12 = vstv %s93_s0  ;;  %v62_v13 = vstv %s95_s27 }
  0x19   :  { %v64_v14 = vstv %s96_s28  ;;  %v63_v17 = vmul.f32 %v62_v13, %v27_v0  ;;  %v67_v20 = vstv %s97_s29 }
  0x1a   :  { %v39_v15 = vadd.f32 %v38_v6, %v37_v9  ;;  %v51_v16 = vadd.f32 %v50_v11, %v48_v10  ;;  %v65_v18 = vmul.f32 %v64_v14, %v28_v1  ;;  %v55_v24 = vstv %s94_s30 }
  0x1b   :  { %v70_v28 = vstv %s98_s4  ;;  %v74_v33 = vstv %s99_s1 }
  0x1c   :  { %v40_v21 = vmax.f32 %v39_v15, 0.0  ;;  %v53_v22 = vadd.f32 %v52_v12, %v51_v16  ;;  %v66_v23 = vadd.f32 %v65_v18, %v63_v17 }
  0x1e   :  { %v42_v25 = vmul.f32 %v41_v19, %v40_v21  ;;  %v54_v26 = vmax.f32 %v53_v22, 0.0  ;;  %v68_v27 = vadd.f32 %v67_v20, %v66_v23 }
  0x20   :  { %v56_v29 = vmul.f32 %v55_v24, %v54_v26  ;;  %v69_v30 = vmax.f32 %v68_v27, 0.0 }
  0x22   :  { %v57_v31 = vadd.f32 %v56_v29, %v42_v25  ;;  %v71_v32 = vmul.f32 %v70_v28, %v69_v30 }
  0x24   :  { %v72_v34 = vadd.f32 %v71_v32, %v57_v31 }
  0x26   :  { %v75_v35 = vadd.f32 %v74_v33, %v72_v34 }
  0x28   :  { %v76_v36 = vsub.f32 0.0, %v75_v35 }
  0x2a   :  { %v77_v37 = vmul.f32 1.442695, %v76_v36 }
  0x2c   :  { %101 = vpow2.f32 %v77_v37 }
  0x36   :  { %v102_v38 = vpop.eup %101 }
  0x37   :  { %v79_v39 = vadd.f32 1.0, %v102_v38 }
  0x39   :  { %103 = vrcp.f32 %v79_v39 }
  0x43   :  { %v104_v40 = vpop.eup %103 }
  0x44   :  { %82 = vst [vmem:[%s158_s3] sm:$0xff] %v104_v40 }
  0x45   :  { %87 = vsyncpa [#allocation3], 1 }

</bundles_post_ra>
